<compile_context>
chip_gen: v6e
topology: v6e:2x2x1
jax: 0.10.0
libtpu: 0.0.40
codegen_flags: <defaults>
</compile_context>

<pallas_src>
import functools

import jax
import jax.numpy as jnp
from jax import lax
from jax.experimental import pallas as pl
from jax.experimental.pallas import tpu as pltpu


def _token_embedding_kernel(x_ref, w_ref, o_ref, *, precision):
    # x_ref: (TB, L+2, Cp)   circularly padded sequences (rows [x_{L-1} | x | x_0])
    # w_ref: (3, Cp, d_model) conv taps stacked on the leading dim
    # o_ref: (TB, L, d_model)
    tb = o_ref.shape[0]
    seq_len = o_ref.shape[1]

    def body(i, carry):
        x_m1 = x_ref[i, pl.ds(0, seq_len), :]   # x[(l-1) % L]
        x_0 = x_ref[i, pl.ds(1, seq_len), :]    # x[l]
        x_p1 = x_ref[i, pl.ds(2, seq_len), :]   # x[(l+1) % L]
        w0 = w_ref[0]
        w1 = w_ref[1]
        w2 = w_ref[2]
        y = jnp.dot(x_m1, w0, preferred_element_type=jnp.float32, precision=precision)
        y = y + jnp.dot(x_0, w1, preferred_element_type=jnp.float32, precision=precision)
        y = y + jnp.dot(x_p1, w2, preferred_element_type=jnp.float32, precision=precision)
        o_ref[i] = y.astype(o_ref.dtype)
        return carry

    lax.fori_loop(0, tb, body, 0)


def _largest_divisor_at_most(n: int, cap: int) -> int:
    cap = max(1, min(n, cap))
    for d in range(cap, 0, -1):
        if n % d == 0:
            return d
    return 1


def token_embedding(
    x: jax.Array,
    weight: jax.Array,
    *,
    out_dtype=None,
    precision=None,
    target_block_bytes: int = 4 << 20,
) -> jax.Array:
    """Equivalent of TokenEmbedding(c_in, d_model)(x) with PyTorch conv weight.

    Args:
      x:      (B, L, c_in) input, batch-first exactly like the PyTorch module.
      weight: (d_model, c_in, 3) Conv1d weight in PyTorch layout.
      out_dtype: output dtype (defaults to x.dtype; pass jnp.bfloat16 to halve
        the dominant output HBM traffic as a deliberate precision trade-off).
      precision: matmul precision; defaults to HIGHEST for f32 inputs
        (parity with a true-f32 PyTorch Conv1d), DEFAULT otherwise.
    Returns:
      (B, L, d_model) in out_dtype.
    """
    assert x.ndim == 3, x.shape
    B, L, c_in = x.shape
    d_model = weight.shape[0]
    assert weight.shape == (d_model, c_in, 3), weight.shape

    out_dtype = x.dtype if out_dtype is None else jnp.dtype(out_dtype)
    if precision is None:
        precision = (lax.Precision.HIGHEST
                     if x.dtype == jnp.float32 else lax.Precision.DEFAULT)

    # Circular halo along L (kernel_size=3, padding=1): rows [x_{L-1} | x | x_0].
    x_pad = jnp.pad(x, ((0, 0), (1, 1), (0, 0)), mode="wrap")       # (B, L+2, c_in)

    # PyTorch conv weight (d_model, c_in, 3) -> (3, c_in, d_model): tap k pairs
    # with the shifted slice at sublane offset k inside the kernel.
    w = jnp.transpose(weight, (2, 1, 0)).astype(x.dtype)            # (3, c_in, d_model)

    # Align the matmul K dim: zero-pad c_in to a multiple of 8 (zeros in both
    # x and weight, so results are unchanged).
    c_pad = ((c_in + 7) // 8) * 8
    if c_pad != c_in:
        x_pad = jnp.pad(x_pad, ((0, 0), (0, 0), (0, c_pad - c_in)))
        w = jnp.pad(w, ((0, 0), (0, c_pad - c_in), (0, 0)))

    # Batch-tile size: aim for a few-MB output block per grid step, clamped to
    # a divisor of B so every block is full (no masked edge blocks).
    out_isz = jnp.dtype(out_dtype).itemsize
    per_seq_out = max(1, L * d_model * out_isz)
    tb_target = max(1, target_block_bytes // per_seq_out)
    TB = _largest_divisor_at_most(B, tb_target)
    grid = (B // TB,)

    # VMEM budget (double-buffered in/out blocks + resident weight) + headroom.
    in_isz = jnp.dtype(x.dtype).itemsize
    in_blk = TB * (L + 2) * c_pad * in_isz
    out_blk = TB * L * d_model * out_isz
    w_bytes = 3 * c_pad * d_model * jnp.dtype(w.dtype).itemsize
    vmem_limit = int(min(2 * (in_blk + out_blk + w_bytes) + (16 << 20), 48 << 20))

    kernel = functools.partial(_token_embedding_kernel, precision=precision)

    return pl.pallas_call(
        kernel,
        out_shape=jax.ShapeDtypeStruct((B, L, d_model), out_dtype),
        grid_spec=pltpu.PrefetchScalarGridSpec(
            num_scalar_prefetch=0,
            grid=grid,
            in_specs=[
                pl.BlockSpec((TB, L + 2, c_pad), lambda b: (b, 0, 0)),
                # Constant index_map -> weight block stays resident in VMEM.
                pl.BlockSpec((3, c_pad, d_model), lambda b: (0, 0, 0)),
            ],
            out_specs=pl.BlockSpec((TB, L, d_model), lambda b: (b, 0, 0)),
        ),
        compiler_params=pltpu.CompilerParams(
            dimension_semantics=("parallel",),
            vmem_limit_bytes=vmem_limit,
        ),
    )(x_pad, w)


def token_embedding_ref(x: jax.Array, weight: jax.Array) -> jax.Array:
    """Pure-JAX reference mirroring the PyTorch circular Conv1d (no bias)."""
    w0 = weight[:, :, 0].T
    w1 = weight[:, :, 1].T
    w2 = weight[:, :, 2].T
    x = x.astype(jnp.float32)
    x_m1 = jnp.roll(x, 1, axis=1)
    x_p1 = jnp.roll(x, -1, axis=1)
    hi = lax.Precision.HIGHEST
    return (jnp.einsum("blc,cd->bld", x_m1, w0, precision=hi)
            + jnp.einsum("blc,cd->bld", x, w1, precision=hi)
            + jnp.einsum("blc,cd->bld", x_p1, w2, precision=hi))


if __name__ == "__main__":
    key = jax.random.PRNGKey(0)
    kx, kw = jax.random.split(key)

    B, L, c_in, d_model = 2, 16, 4, 32
    x = jax.random.normal(kx, (B, L, c_in), dtype=jnp.float32)
    # Conv1d weight, PyTorch layout (out, in, k=3); kaiming-style fan_in scale.
    fan_in = c_in * 3
    weight = jax.random.normal(kw, (d_model, c_in, 3), dtype=jnp.float32) * (2.0 / fan_in) ** 0.5

    out = token_embedding(x, weight)
    out = jax.block_until_ready(out)

    ref = token_embedding_ref(x, weight)
    assert out.shape == (B, L, d_model), out.shape
    assert out.dtype == jnp.float32, out.dtype
    assert jnp.allclose(out, ref, atol=1e-3, rtol=1e-3), "mismatch vs reference"

    print("KERNEL_OK")
</pallas_src>

<mosaic_0001>
module attributes {stable_mosaic.version = 11 : i64} {
  func.func @_token_embedding_kernel(%arg0: i32, %arg1: memref<2x18x8xf32, #tpu.memory_space<vmem>>, %arg2: memref<3x8x32xf32, #tpu.memory_space<vmem>>, %arg3: memref<2x16x32xf32, #tpu.memory_space<vmem>>) attributes {dimension_semantics = [#tpu.dimension_semantics<parallel>], iteration_bounds = array<i64: 1>, scalar_prefetch = 0 : i64, scratch_operands = 0 : i64, tpu.core_type = #tpu.core_type<tc>, window_params = [{transform_indices = @transform_0, window_bounds = array<i64: 2, 18, 8>}, {pipeline_mode = #tpu.pipeline_mode<synchronous>, transform_indices = @transform_1, window_bounds = array<i64: 3, 8, 32>}, {transform_indices = @transform_2, window_bounds = array<i64: 2, 16, 32>}]} {
    %c0_i32 = arith.constant 0 : i32
    %c2_i32 = arith.constant 2 : i32
    %0 = arith.addi %c0_i32, %c2_i32 : i32
    %c1_i32 = arith.constant 1 : i32
    scf.for %arg4 = %c0_i32 to %0 step %c1_i32  : i32 {
      %1 = arith.index_cast %arg4 : i32 to index
      %c0 = arith.constant 0 : index
      %c0_1 = arith.constant 0 : index
      %2 = vector.load %arg1[%1, %c0, %c0_1] : memref<2x18x8xf32, #tpu.memory_space<vmem>>, vector<1x16x8xf32>
      %3 = vector.shape_cast %2 : vector<1x16x8xf32> to vector<16x8xf32>
      %4 = arith.index_cast %arg4 : i32 to index
      %c1 = arith.constant 1 : index
      %c0_2 = arith.constant 0 : index
      %5 = vector.load %arg1[%4, %c1, %c0_2] : memref<2x18x8xf32, #tpu.memory_space<vmem>>, vector<1x16x8xf32>
      %6 = vector.shape_cast %5 : vector<1x16x8xf32> to vector<16x8xf32>
      %7 = arith.index_cast %arg4 : i32 to index
      %c2 = arith.constant 2 : index
      %c0_3 = arith.constant 0 : index
      %8 = vector.load %arg1[%7, %c2, %c0_3] : memref<2x18x8xf32, #tpu.memory_space<vmem>>, vector<1x16x8xf32>
      %9 = vector.shape_cast %8 : vector<1x16x8xf32> to vector<16x8xf32>
      %c0_4 = arith.constant 0 : index
      %c0_5 = arith.constant 0 : index
      %c0_6 = arith.constant 0 : index
      %10 = vector.load %arg2[%c0_4, %c0_5, %c0_6] : memref<3x8x32xf32, #tpu.memory_space<vmem>>, vector<1x8x32xf32>
      %11 = vector.shape_cast %10 : vector<1x8x32xf32> to vector<8x32xf32>
      %c1_7 = arith.constant 1 : index
      %c0_8 = arith.constant 0 : index
      %c0_9 = arith.constant 0 : index
      %12 = vector.load %arg2[%c1_7, %c0_8, %c0_9] : memref<3x8x32xf32, #tpu.memory_space<vmem>>, vector<1x8x32xf32>
      %13 = vector.shape_cast %12 : vector<1x8x32xf32> to vector<8x32xf32>
      %c2_10 = arith.constant 2 : index
      %c0_11 = arith.constant 0 : index
      %c0_12 = arith.constant 0 : index
      %14 = vector.load %arg2[%c2_10, %c0_11, %c0_12] : memref<3x8x32xf32, #tpu.memory_space<vmem>>, vector<1x8x32xf32>
      %15 = vector.shape_cast %14 : vector<1x8x32xf32> to vector<8x32xf32>
      %cst = arith.constant dense<0.000000e+00> : vector<16x32xf32>
      %16 = tpu.matmul %3, %11, %cst {dimension_numbers = #tpu.dot_dimension_numbers<[1], [0], [0], [1], [0, 0, 1, 1], [], []>, precision = #tpu.contract_precision<fp32>} : vector<16x8xf32>, vector<8x32xf32>, vector<16x32xf32> -> vector<16x32xf32>
      %cst_13 = arith.constant dense<0.000000e+00> : vector<16x32xf32>
      %17 = tpu.matmul %6, %13, %cst_13 {dimension_numbers = #tpu.dot_dimension_numbers<[1], [0], [0], [1], [0, 0, 1, 1], [], []>, precision = #tpu.contract_precision<fp32>} : vector<16x8xf32>, vector<8x32xf32>, vector<16x32xf32> -> vector<16x32xf32>
      %18 = arith.addf %16, %17 : vector<16x32xf32>
      %cst_14 = arith.constant dense<0.000000e+00> : vector<16x32xf32>
      %19 = tpu.matmul %9, %15, %cst_14 {dimension_numbers = #tpu.dot_dimension_numbers<[1], [0], [0], [1], [0, 0, 1, 1], [], []>, precision = #tpu.contract_precision<fp32>} : vector<16x8xf32>, vector<8x32xf32>, vector<16x32xf32> -> vector<16x32xf32>
      %20 = arith.addf %18, %19 : vector<16x32xf32>
      %21 = arith.index_cast %arg4 : i32 to index
      %c0_15 = arith.constant 0 : index
      %c0_16 = arith.constant 0 : index
      %22 = vector.load %arg3[%21, %c0_15, %c0_16] : memref<2x16x32xf32, #tpu.memory_space<vmem>>, vector<1x16x32xf32>
      %23 = vector.shape_cast %22 : vector<1x16x32xf32> to vector<16x32xf32>
      %24 = vector.shape_cast %20 : vector<16x32xf32> to vector<1x16x32xf32>
      tpu.vector_store %arg3[%21, %c0_15, %c0_16], %24 {strides = array<i32>} : memref<2x16x32xf32, #tpu.memory_space<vmem>>, vector<1x16x32xf32>,
    }
    %c2_i32_0 = arith.constant 2 : i32
    return
  }
  func.func @transform_0(%arg0: i32) -> (i32, i32, i32) {
    %c0_i32 = arith.constant 0 : i32
    %c0_i32_0 = arith.constant 0 : i32
    %c0_i32_1 = arith.constant 0 : i32
    return %arg0, %c0_i32, %c0_i32_0 : i32, i32, i32
  }
  func.func @transform_1(%arg0: i32) -> (i32, i32, i32) {
    %c0_i32 = arith.constant 0 : i32
    %c0_i32_0 = arith.constant 0 : i32
    %c0_i32_1 = arith.constant 0 : i32
    %c0_i32_2 = arith.constant 0 : i32
    return %c0_i32, %c0_i32_0, %c0_i32_1 : i32, i32, i32
  }
  func.func @transform_2(%arg0: i32) -> (i32, i32, i32) {
    %c0_i32 = arith.constant 0 : i32
    %c0_i32_0 = arith.constant 0 : i32
    %c0_i32_1 = arith.constant 0 : i32
    return %arg0, %c0_i32, %c0_i32_0 : i32, i32, i32
  }
}

</mosaic_0001>

<bundles_post_ra>
// kernel: tpu_custom_call.1
= control target key start
LH: loop header
LB: loop body
LE: loop exit
PB: predicated region body
PF: predicated region fallthrough
CT: control target
= control target key end

     0   :  { %7 = vsyncpa [#allocation3], 0  ;;  %s1755_s9 = smov 0   ;;  %s1857_s0 = inlined_call_operand.vmem [shape: f32[2,18,8], index: 0, kind: input, shape index: {}]   ;;  %s1858_s1 = inlined_call_operand.vmem [shape: f32[3,8,32], index: 1, kind: input, shape index: {}]   ;;  %s1859_s2 = inlined_call_operand.hbm [shape: f32[2,16,32], index: 2, kind: output, shape index: {}]  }
   0x1 LB: > { %v1549_v0 = vld [vmem:[%s1858_s1 + $0x8] sm:$0xff]  ;;  %v26_v1 = vld [vmem:[%s1858_s1] sm:$0xff]  ;;  %s18_s14 = smul.u32 24, %s1735_s9  ;;  %vm31_vm0 = vcmask 64512   ;;  %v1550_v24 = vld [vmem:[%s1858_s1 + $0x10] sm:$0xff]  ;;  %s1551_s20 = sshll.u32 %s1735_s9, 4  ;;  %s1735_s9 = sphi %s1755_s9, %s17_s9  }
   0x2   : > { %v69_v2 = vand.u32 4294901760, %v1549_v0  ;;  %v1766_v3 = vand.u32 4294901760, %v26_v1  ;;  %v1803_v31 = vand.u32 4294901760, %v1550_v24  ;;  %vm1521_vm1 = vcmask 261120   ;;  %s1520_s21 = scalar_lea.vmem [#allocation2], %s1551_s20  ;;  %s17_s9 = sadd.s32 1, %s1735_s9  }
   0x3   : > { %s1772_s17 = scalar_lea.vmem %s1857_s0, %s18_s14  ;;  %p14_p0 = scmp.ge.s32.totalorder %s17_s9, 2  }
   0x4   : > { %1606 = vmatprep.subr.mxu0 %v69_v2  ;;  %v156_v4 = vsub.f32 %v1549_v0, %v69_v2  ;;  %v22_v6 = vld [vmem:[%s1772_s17 + $0x1] sm:$0xff]  ;;  %v23_v7 = vld [vmem:[%s1772_s17 + $0x9] sm:$0xff]  ;;  %v1779_v8 = vsub.f32 %v26_v1, %v1766_v3  ;;  %v1811_v40 = vsub.f32 %v1550_v24, %v1803_v31  ;;  %s1737_s22 = smov (%p14_p0), [#allocation2]  }
   0x5   : > { %1607 = vmatpush3.msra.mxu0 %v69_v2  ;;  %v20_v9 = vld [vmem:[%s1772_s17] sm:$0xff]  ;;  %v33_v10 = vsel %vm31_vm0, %v22_v6, 0  ;;  %v36_v11 = vsel %vm31_vm0, %v23_v7, 0  ;;  %v21_v13 = vld [vmem:[%s1772_s17 + $0x8] sm:$0xff]  ;;  %s1529_s23 = sshll.u32 (%p14_p0), %s1737_s22, 4  ;;  %s1530_s23 = int_to_ptr.vmem [resolvable:$true] %s1529_s23 }
   0x6   : > { %v1774_v5 = vand.u32 4294901760, %v156_v4  ;;  %1616 = vmatprep.subr.mxu0 %v156_v4  ;;  %v528_v12 = vsel %vm31_vm0, %v20_v9, 0  ;;  %v104_v15 = vand.u32 4294901760, %v33_v10  ;;  %v114_v16 = vand.u32 4294901760, %v36_v11  ;;  %v24_v32 = vld [vmem:[%s1772_s17 + $0x2] sm:$0xff]  ;;  %v25_v38 = vld [vmem:[%s1772_s17 + $0xa] sm:$0xff]  ;;  %p1712_p2 = scmp.lt.s32.totalorder (%p14_p0), %s1530_s23, %s1530_s23 }
   0x7   : > { %v1787_v17 = vand.u32 4294901760, %v528_v12  ;;  %v531_v18 = vsel %vm31_vm0, %v21_v13, 0  ;;  %v1791_v22 = vand.u32 4294901760, %v1779_v8  ;;  %v1023_v37 = vsel %vm31_vm0, %v24_v32, 0  ;;  %s1707_s24 = scalar_lea.vmem (%p14_p0), %s1530_s23, 512 }
   0x8   : > { %v158_v14 = vsub.f32 %v156_v4, %v1774_v5  ;;  %v105_v20 = vsub.f32 %v33_v10, %v104_v15  ;;  %1613 = vmatprep.mubr.f32.mxu1 %v104_v15  ;;  %v115_v21 = vsub.f32 %v36_v11, %v114_v16  ;;  %v1793_v23 = vand.u32 4294901760, %v531_v18  ;;  %p1708_p1 = scmp.ne.s32.totalorder (%p14_p0), %s1530_s23, %s1707_s24  ;;  %p1713_p3 = scmp.lt.s32.totalorder (%p14_p0), %s1707_s24, %s1707_s24 }
   0x9   : > { %v1799_v27 = vsub.f32 %v528_v12, %v1787_v17  ;;  %v653_v30 = vsub.f32 %v1779_v8, %v1791_v22  ;;  %v1814_v43 = vand.u32 4294901760, %v1023_v37  ;;  %v1026_v44 = vsel %vm31_vm0, %v25_v38, 0 }
   0xa   : > { %v159_v19 = vand.u32 4294901760, %v158_v14  ;;  %v106_v25 = vand.u32 4294901760, %v105_v20  ;;  %v116_v26 = vand.u32 4294901760, %v115_v21  ;;  %v610_v33 = vsub.f32 %v531_v18, %v1793_v23  ;;  %p1714_p4 = por (%p14_p0), %p1713_p3, %p1712_p2 }
   0xb   : > { %v601_v36 = vand.u32 4294901760, %v1799_v27  ;;  %v654_v39 = vand.u32 4294901760, %v653_v30  ;;  %v1147_v45 = vand.u32 4294901760, %v1811_v40  ;;  %v1104_v47 = vand.u32 4294901760, %v1026_v44 }
   0xc   : > { %1611 = vmatprep.subr.mxu1 %v159_v19  ;;  %v107_v28 = vsub.f32 %v105_v20, %v106_v25  ;;  %v117_v29 = vsub.f32 %v115_v21, %v116_v26  ;;  %v611_v41 = vand.u32 4294901760, %v610_v33  ;;  %v1095_v49 = vsub.f32 %v1023_v37, %v1814_v43  ;;  %p1715_p5 = pnand (%p14_p0), %p1714_p4, %p1708_p1 }
   0xd   : > { %1612 = vmatpush3.msra.mxu1 %v159_v19  ;;  %v602_v42 = vsub.f32 %v1799_v27, %v601_v36  ;;  %v1148_v50 = vsub.f32 %v1811_v40, %v1147_v45  ;;  %v1105_v52 = vsub.f32 %v1026_v44, %v1104_v47 }
   0xe   : > { %1614 = vmatmul.mubr.f32.vlgmr.msra.gmra.mxu1 %v114_v16  ;;  %1621 = vmatprep.subr.mxu1 %v69_v2  ;;  %v108_v34 = vand.u32 4294901760, %v107_v28  ;;  %v118_v35 = vand.u32 4294901760, %v117_v29  ;;  %v612_v46 = vsub.f32 %v610_v33, %v611_v41  ;;  %v1096_v53 = vand.u32 4294901760, %v1095_v49 }
   0xf   : > { %1622 = vmatpush3.msra.mxu1 %v69_v2  ;;  %1623 = vmatprep.mubr.f32.mxu1 %v106_v25  ;;  %v603_v48 = vand.u32 4294901760, %v602_v42  ;;  %v1149_v54 = vand.u32 4294901760, %v1148_v50  ;;  %v1106_v55 = vand.u32 4294901760, %v1105_v52 }
  0x10   : > { %1631 = vmatprep.subr.mxu1 %v69_v2  ;;  %1608 = vmatprep.mubr.f32.mxu0 %v108_v34  ;;  %v613_v51 = vand.u32 4294901760, %v612_v46  ;;  %v1097_v56 = vsub.f32 %v1095_v49, %v1096_v53 }
  0x11   : > { %1609 = vmatmul.mubr.f32.vlgmr.msra.gmra.mxu0 %v118_v35  ;;  %v1107_v57 = vsub.f32 %v1105_v52, %v1106_v55 }
  0x12   : > { %1624 = vmatmul.mubr.f32.vlgmr.msra.gmra.mxu1 %v116_v26  ;;  %1617 = vmatpush3.msra.mxu0 %v156_v4  ;;  %v1098_v58 = vand.u32 4294901760, %v1097_v56 }
  0x13   : > { %1632 = vmatpush3.msra.mxu1 %v69_v2  ;;  %1618 = vmatprep.mubr.f32.mxu0 %v105_v20  ;;  %v1108_v59 = vand.u32 4294901760, %v1107_v57 }
  0x14   : > { %1626 = vmatprep.subr.mxu0 %v1774_v5  ;;  %1633 = vmatprep.mubr.f32.mxu1 %v104_v15 }
  0x15   : > { %1641 = vmatprep.subr.mxu1 %v654_v39  ;;  %1619 = vmatmul.mubr.f32.vlgmr.msra.gmra.mxu0 %v115_v21 }
  0x16   : > { %1634 = vmatmul.mubr.f32.vlgmr.msra.gmra.mxu1 %v114_v16  ;;  %1627 = vmatpush3.msra.mxu0 %v1774_v5 }
  0x17   : > { %1642 = vmatpush3.msra.mxu1 %v654_v39  ;;  %1628 = vmatprep.mubr.f32.mxu0 %v104_v15 }
  0x18   : > { %1636 = vmatprep.subr.mxu0 %v1766_v3  ;;  %1643 = vmatprep.mubr.f32.mxu1 %v1787_v17 }
  0x19   : > { %1651 = vmatprep.subr.mxu1 %v1766_v3  ;;  %1629 = vmatmul.mubr.f32.vlgmr.msra.gmra.mxu0 %v114_v16 }
  0x1a   : > { %1644 = vmatmul.mubr.f32.vlgmr.msra.gmra.mxu1 %v1793_v23  ;;  %1637 = vmatpush3.msra.mxu0 %v1766_v3 }
  0x1b   : > { %1652 = vmatpush3.msra.mxu1 %v1766_v3  ;;  %1638 = vmatprep.mubr.f32.mxu0 %v603_v48 }
  0x1c   : > { %1646 = vmatprep.subr.mxu0 %v1779_v8  ;;  %1653 = vmatprep.mubr.f32.mxu1 %v601_v36 }
  0x1d   : > { %1661 = vmatprep.subr.mxu1 %v1766_v3  ;;  %1639 = vmatmul.mubr.f32.vlgmr.msra.gmra.mxu0 %v613_v51 }
  0x1e   : > { %1654 = vmatmul.mubr.f32.vlgmr.msra.gmra.mxu1 %v611_v41  ;;  %1647 = vmatpush3.msra.mxu0 %v1779_v8 }
  0x1f   : > { %1662 = vmatpush3.msra.mxu1 %v1766_v3  ;;  %1648 = vmatprep.mubr.f32.mxu0 %v1799_v27 }
  0x20   : > { %1656 = vmatprep.subr.mxu0 %v1791_v22  ;;  %1663 = vmatprep.mubr.f32.mxu1 %v1787_v17 }
  0x21   : > { %1671 = vmatprep.subr.mxu1 %v1149_v54  ;;  %1649 = vmatmul.mubr.f32.vlgmr.msra.gmra.mxu0 %v610_v33 }
  0x22   : > { %1664 = vmatmul.mubr.f32.vlgmr.msra.gmra.mxu1 %v1793_v23  ;;  %1657 = vmatpush3.msra.mxu0 %v1791_v22 }
  0x23   : > { %1672 = vmatpush3.msra.mxu1 %v1149_v54  ;;  %1658 = vmatprep.mubr.f32.mxu0 %v1787_v17 }
  0x24   : > { %1666 = vmatprep.subr.mxu0 %v1803_v31  ;;  %1673 = vmatprep.mubr.f32.mxu1 %v1814_v43 }
  0x25   : > { %1681 = vmatprep.subr.mxu1 %v1803_v31  ;;  %1659 = vmatmul.mubr.f32.vlgmr.msra.gmra.mxu0 %v1793_v23 }
  0x26   : > { %1674 = vmatmul.mubr.f32.vlgmr.msra.gmra.mxu1 %v1104_v47  ;;  %1667 = vmatpush3.msra.mxu0 %v1803_v31 }
  0x27   : > { %1682 = vmatpush3.msra.mxu1 %v1803_v31  ;;  %1668 = vmatprep.mubr.f32.mxu0 %v1098_v58 }
  0x28   : > { %1676 = vmatprep.subr.mxu0 %v1811_v40  ;;  %1683 = vmatprep.mubr.f32.mxu1 %v1096_v53 }
  0x29   : > { %1691 = vmatprep.subr.mxu1 %v1803_v31  ;;  %1669 = vmatmul.mubr.f32.vlgmr.msra.gmra.mxu0 %v1108_v59 }
  0x2a   : > { %1684 = vmatmul.mubr.f32.vlgmr.msra.gmra.mxu1 %v1106_v55  ;;  %1677 = vmatpush3.msra.mxu0 %v1811_v40 }
  0x2b   : > { %1692 = vmatpush3.msra.mxu1 %v1803_v31  ;;  %1678 = vmatprep.mubr.f32.mxu0 %v1095_v49 }
  0x2c   : > { %1686 = vmatprep.subr.mxu0 %v1147_v45  ;;  %1693 = vmatprep.mubr.f32.mxu1 %v1814_v43 }
  0x2d   : > { %1679 = vmatmul.mubr.f32.vlgmr.msra.gmra.mxu0 %v1105_v52 }
  0x2e   : > { %1694 = vmatmul.mubr.f32.vlgmr.msra.gmra.mxu1 %v1104_v47  ;;  %1687 = vmatpush3.msra.mxu0 %v1147_v45 }
  0x2f   : > { %1688 = vmatprep.mubr.f32.mxu0 %v1814_v43 }
  0x31   : > { %1689 = vmatmul.mubr.f32.vlgmr.msra.gmra.mxu0 %v1104_v47 }
  0xce   : > { %v1615_v60 = vpop.f32.mrf.mxu1 }
  0xd0   : > { %v196_v61 = vpop.f32.mrf.mxu1 }
  0xd1   : > { %v1610_v63 = vpop.f32.mrf.mxu0 }
  0xd2   : > { %v1625_v62 = vpop.f32.mrf.mxu1  ;;  %v203_v2 = vadd.f32 %v1615_v60, %v1610_v63 }
  0xd3   : > { %v110_v1 = vpop.f32.mrf.mxu0 }
  0xd4   : > { %v357_v0 = vpop.f32.mrf.mxu1  ;;  %v197_v5 = vadd.f32 %v196_v61, %v110_v1 }
  0xd5   : > { %v1620_v4 = vpop.f32.mrf.mxu0 }
  0xd6   : > { %v1635_v3 = vpop.f32.mrf.mxu1  ;;  %v284_v6 = vadd.f32 %v1620_v4, %v203_v2 }
  0xd7   : > { %v276_v8 = vpop.f32.mrf.mxu0 }
  0xd8   : > { %v517_v7 = vpop.f32.mrf.mxu1  ;;  %v366_v9 = vadd.f32 %v1625_v62, %v284_v6  ;;  %v277_v10 = vadd.f32 %v276_v8, %v197_v5 }
  0xd9   : > { %v1630_v12 = vpop.f32.mrf.mxu0 }
  0xda   : > { %v1645_v11 = vpop.f32.mrf.mxu1  ;;  %v358_v13 = vadd.f32 %v357_v0, %v277_v10  ;;  %v446_v14 = vadd.f32 %v1630_v12, %v366_v9 }
  0xdb   : > { %v439_v16 = vpop.f32.mrf.mxu0 }
  0xdc   : > { %v691_v15 = vpop.f32.mrf.mxu1  ;;  %v524_v17 = vadd.f32 %v1635_v3, %v446_v14  ;;  %v440_v18 = vadd.f32 %v439_v16, %v358_v13 }
  0xdd   : > { %v1640_v20 = vpop.f32.mrf.mxu0 }
  0xde   : > { %v1655_v19 = vpop.f32.mrf.mxu1  ;;  %v518_v21 = vadd.f32 %v517_v7, %v440_v18  ;;  %v616_v24 = vadd.f32 %v1640_v20, %v524_v17 }
  0xdf   : > { %v605_v23 = vpop.f32.mrf.mxu0 }
  0xe0   : > { %v852_v22 = vpop.f32.mrf.mxu1  ;;  %v606_v27 = vadd.f32 %v605_v23, %v518_v21  ;;  %v698_v30 = vadd.f32 %v1645_v11, %v616_v24 }
  0xe1   : > { %v1650_v26 = vpop.f32.mrf.mxu0 }
  0xe2   : > { %v1665_v25 = vpop.f32.mrf.mxu1  ;;  %v692_v33 = vadd.f32 %v691_v15, %v606_v27  ;;  %v779_v36 = vadd.f32 %v1650_v26, %v698_v30 }
  0xe3   : > { %v771_v29 = vpop.f32.mrf.mxu0 }
  0xe4   : > { %v1012_v28 = vpop.f32.mrf.mxu1  ;;  %v772_v39 = vadd.f32 %v771_v29, %v692_v33  ;;  %v861_v41 = vadd.f32 %v1655_v19, %v779_v36 }
  0xe5   : > { %v1660_v32 = vpop.f32.mrf.mxu0 }
  0xe6   : > { %v1675_v31 = vpop.f32.mrf.mxu1  ;;  %v853_v45 = vadd.f32 %v852_v22, %v772_v39  ;;  %v941_v49 = vadd.f32 %v1660_v32, %v861_v41 }
  0xe7   : > { %v934_v35 = vpop.f32.mrf.mxu0 }
  0xe8   : > { %v1186_v34 = vpop.f32.mrf.mxu1  ;;  %v935_v54 = vadd.f32 %v934_v35, %v853_v45  ;;  %v1019_v58 = vadd.f32 %v1665_v25, %v941_v49 }
  0xe9   : > { %v1670_v37 = vpop.f32.mrf.mxu0 }
  0xea   : > { %v1685_v38 = vpop.f32.mrf.mxu1  ;;  %v1193_v42 = vadd.f32 %v1675_v31, %v1670_v37  ;;  %v1013_v62 = vadd.f32 %v1012_v28, %v935_v54 }
  0xeb   : > { %v1100_v40 = vpop.f32.mrf.mxu0 }
  0xec   : > { %v1347_v44 = vpop.f32.mrf.mxu1  ;;  %v1187_v46 = vadd.f32 %v1186_v34, %v1100_v40 }
  0xed   : > { %v1680_v43 = vpop.f32.mrf.mxu0 }
  0xee   : > { %v1274_v47 = vadd.f32 %v1680_v43, %v1193_v42  ;;  %v1695_v53 = vpop.f32.mrf.mxu1 }
  0xef   : > { %v1266_v48 = vpop.f32.mrf.mxu0 }
  0xf0   : > { %v1356_v50 = vadd.f32 %v1685_v38, %v1274_v47  ;;  %v1267_v51 = vadd.f32 %v1266_v48, %v1187_v46  ;;  %v1507_v61 = vpop.f32.mrf.mxu1 }
  0xf1   : > { %v1690_v52 = vpop.f32.mrf.mxu0 }
  0xf2   : > { %v1348_v55 = vadd.f32 %v1347_v44, %v1267_v51  ;;  %v1436_v56 = vadd.f32 %v1690_v52, %v1356_v50 }
  0xf3   : > { %v1429_v57 = vpop.f32.mrf.mxu0 }
  0xf4   : > { %v1514_v59 = vadd.f32 %v1695_v53, %v1436_v56  ;;  %v1430_v60 = vadd.f32 %v1429_v57, %v1348_v55 }
  0xf6   : > { %v1518_v63 = vadd.f32 %v1514_v59, %v1019_v58  ;;  %v1508_v0 = vadd.f32 %v1507_v61, %v1430_v60  ;;  %16 = sbr.rel (!%p14_p0) target bundleno = 1 (0x1), region = 39 }
  0xf8   : > { %1523 = vst.msk [vmem:[%s1520_s21 + $0x8] sm:$0xff] %vm1521_vm1, %v1518_v63  ;;  %v1517_v1 = vadd.f32 %v1508_v0, %v1013_v62 }
  0xfa   : > { %1522 = vst.msk [vmem:[%s1520_s21] sm:$0xff] %vm1521_vm1, %v1517_v1 }
  0xfb   :  { %1718 = shalt.err (!%p1715_p5)
}
  0xfc   :  { %s1738_s25 = smov 128   ;;  %s1739_s26 = smov 8  }
  0xfd   :  { %1535 = dma.vmem_to_hbm [thread:$0]  %s1530_s23, 512, %s1859_s2, [#allocation3], %s1738_s25, %s1738_s25, %s1739_s26  }
  0xfe   :  { %1731 = dma.done.wait [#allocation3], 512  }
  0xff   :  { %1732 = vsyncadd [#allocation3], 4294966784 }
 0x100   :  { %1539 = vsyncpa [#allocation3], 1 }

</bundles_post_ra>
